<compile_context>
chip_gen: v6e
topology: v6e:2x2x1
jax: 0.10.0
libtpu: 0.0.40
codegen_flags: <defaults>
</compile_context>

<pallas_src>
import functools
import math

import jax
import jax.numpy as jnp
from jax.experimental import pallas as pl
from jax.experimental.pallas import tpu as pltpu


def _round_up(a, m):
    return ((a + m - 1) // m) * m


def _gin_kernel(*refs, add_loop, has_mask, folded, share_row):
    """One (batch-tile, row-tile, K-tile) grid step of the dense GIN layer."""
    pos = 0

    def take():
        nonlocal pos
        r = refs[pos]
        pos += 1
        return r

    eps_ref = take() if add_loop else None          # (1,) f32 in SMEM: 1 + eps
    adj_ref = take()                                # (bt, tm, tk)   native dtype
    feat_ref = take()                               # (bt, tk, Dmid) native dtype
    row_ref = take() if (add_loop and not share_row) else None   # (bt, tm, Dmid)
    mask_ref = take() if has_mask else None         # (bt, tm) f32
    w1_ref = None if folded else take()             # (Din, H) bf16
    b1_ref = take()                                 # (1, H) f32
    w2_ref = take()                                 # (H, DoutP) bf16
    b2_ref = take()                                 # (1, DoutP) f32
    o_ref = take()                                  # (bt, tm, DoutP)
    acc_ref = take()                                # (bt, tm, Dmid) f32 scratch

    k = pl.program_id(2)

    @pl.when(k == 0)
    def _():
        acc_ref[...] = jnp.zeros_like(acc_ref)

    # Neighborhood aggregation for this K strip.  Operands are cast to bf16
    # per tile (no padded bf16 copies in HBM); accumulation is f32.
    adj_blk = adj_ref[...].astype(jnp.bfloat16)
    feat_blk = feat_ref[...].astype(jnp.bfloat16)
    acc_ref[...] += jnp.einsum("bij,bjd->bid", adj_blk, feat_blk,
                               preferred_element_type=jnp.float32)

    @pl.when(k == pl.num_programs(2) - 1)
    def _():
        agg = acc_ref[...]
        if add_loop:
            rows = feat_ref[...] if share_row else row_ref[...]
            agg = agg + eps_ref[0] * rows.astype(jnp.float32)

        bt_, t_, dm = agg.shape
        a2 = agg.reshape(bt_ * t_, dm)              # M = bt*tm for the MXU
        if folded:
            # Linear1 already folded into the aggregation (feat == x @ W1);
            # only its bias + ReLU remain.
            h = jnp.maximum(a2 + b1_ref[...], 0.0)
        else:
            h = jnp.dot(a2.astype(jnp.bfloat16), w1_ref[...],
                        preferred_element_type=jnp.float32)
            h = jnp.maximum(h + b1_ref[...], 0.0)
        y = jnp.dot(h.astype(jnp.bfloat16), w2_ref[...],
                    preferred_element_type=jnp.float32) + b2_ref[...]
        y = y.reshape(bt_, t_, y.shape[-1])
        if has_mask:
            y = y * mask_ref[...][:, :, None]
        o_ref[...] = y.astype(o_ref.dtype)


def dense_gin_forward(x, adj, w1, b1, w2, b2, mask=None, *,
                      eps=0.0, add_loop=True):
    """Pallas TPU implementation of Dense_GIN_layer.forward.

    x: (B, N, Din)   adj: (B, N, N)   mask: (B, N) or None
    w1: (Din, H)  b1: (H,)  w2: (H, Dout)  b2: (Dout,)
    returns (B, N, Dout) in x.dtype
    """
    B, N, Din = x.shape
    H = w1.shape[1]
    Dout = w2.shape[1]
    out_dtype = x.dtype

    # ---- fold Linear1 into the aggregation when it shrinks the feature dim ----
    # (adj@x + (1+eps)x) @ W1 + b1 == adj@(x@W1) + (1+eps)(x@W1) + b1.
    folded = H <= Din
    if folded:
        feat = jnp.einsum("bnd,dh->bnh", x.astype(jnp.float32),
                          w1.astype(jnp.float32))
    else:
        feat = x
    Dmid = feat.shape[-1]

    # ---- tile sizes ------------------------------------------------------------
    if N <= 128:
        tm = _round_up(N, 8)              # whole graph in one row tile
        n_pad = tm
        tk = tm
    else:
        tm = 128                          # adjacency row strip
        n_pad = _round_up(N, 128)         # decoupled from the old 256 rounding
        if n_pad % 512 == 0:
            tk = 512
        elif n_pad % 256 == 0:
            tk = 256
        else:
            tk = 128
    n_row_tiles = n_pad // tm
    n_k_tiles = n_pad // tk
    share_row = (n_row_tiles == 1 and n_k_tiles == 1)   # K view == row view

    # graphs packed per grid step (amortize tiny graphs; MLP M = bt*tm)
    bt = max(1, min(B, 256 // tm))
    if bt > 1:
        if _round_up(B, bt) != bt and bt % 8 != 0:
            bt = 1                        # keep 2-D mask block (bt, tm) layout-legal
    b_pad = _round_up(B, bt)

    DoutP = _round_up(Dout, 128)          # lane-dense output stores
    has_mask = mask is not None

    # ---- pad only when actually misaligned (native dtype, no bf16 copy) -------
    pad_nodes = n_pad != N
    pad_batch = b_pad != B
    if pad_nodes or pad_batch:
        adj_p = jnp.zeros((b_pad, n_pad, n_pad), adj.dtype).at[:B, :N, :N].set(adj)
        feat_p = jnp.zeros((b_pad, n_pad, Dmid), feat.dtype).at[:B, :N, :].set(feat)
    else:
        adj_p, feat_p = adj, feat

    if has_mask:
        m2 = jnp.reshape(mask, (B, N)).astype(jnp.float32)
        if pad_nodes or pad_batch:
            mask_p = jnp.zeros((b_pad, n_pad), jnp.float32).at[:B, :N].set(m2)
        else:
            mask_p = m2

    b1_in = b1.astype(jnp.float32).reshape(1, H)
    if DoutP != Dout:
        w2_in = jnp.zeros((H, DoutP), jnp.bfloat16).at[:, :Dout].set(
            w2.astype(jnp.bfloat16))
        b2_in = jnp.zeros((1, DoutP), jnp.float32).at[0, :Dout].set(
            b2.astype(jnp.float32))
    else:
        w2_in = w2.astype(jnp.bfloat16)
        b2_in = b2.astype(jnp.float32).reshape(1, DoutP)

    # ---- inputs + BlockSpecs (variant-dependent) -------------------------------
    inputs, specs = [], []
    if add_loop:
        one_plus_eps = (jnp.asarray(eps, jnp.float32) + 1.0).reshape((1,))
        inputs.append(one_plus_eps)
        specs.append(pl.BlockSpec(memory_space=pltpu.MemorySpace.SMEM))
    inputs.append(adj_p)
    specs.append(pl.BlockSpec((bt, tm, tk), lambda b, r, k: (b, r, k)))
    inputs.append(feat_p)                                   # K view (aggregation)
    specs.append(pl.BlockSpec((bt, tk, Dmid), lambda b, r, k: (b, k, 0)))
    if add_loop and not share_row:
        inputs.append(feat_p)                               # row view (self-loop)
        specs.append(pl.BlockSpec((bt, tm, Dmid), lambda b, r, k: (b, r, 0)))
    if has_mask:
        inputs.append(mask_p)
        specs.append(pl.BlockSpec((bt, tm), lambda b, r, k: (b, r)))
    if not folded:
        inputs.append(w1.astype(jnp.bfloat16))
        specs.append(pl.BlockSpec((Din, H), lambda b, r, k: (0, 0)))
    inputs.append(b1_in)
    specs.append(pl.BlockSpec((1, H), lambda b, r, k: (0, 0)))
    inputs.append(w2_in)
    specs.append(pl.BlockSpec((H, DoutP), lambda b, r, k: (0, 0)))
    inputs.append(b2_in)
    specs.append(pl.BlockSpec((1, DoutP), lambda b, r, k: (0, 0)))

    # ---- VMEM budget: double-buffered blocks + scratch, per-generation cap -----
    isz = lambda a: jnp.dtype(a.dtype).itemsize
    est = 2 * (bt * tm * tk * isz(adj_p)
               + bt * tk * Dmid * isz(feat_p)
               + (bt * tm * Dmid * isz(feat_p) if (add_loop and not share_row) else 0)
               + (bt * tm * 4 if has_mask else 0)
               + (0 if folded else Din * H * 2) + H * 4 + H * DoutP * 2 + DoutP * 4
               + bt * tm * DoutP * 4)
    est += bt * tm * Dmid * 4                       # f32 accumulator scratch
    try:
        cap = pltpu.get_tpu_info().vmem_capacity_bytes
    except Exception:
        cap = 64 * 1024 * 1024                      # conservative (v7x per core)
    ceiling = (5 * cap) // 8                        # ~40 MiB on v7x, ~80 MiB v5e/v6e
    vmem_limit = int(min(ceiling, max(32 * 1024 * 1024,
                                      int(1.25 * est) + (2 << 20))))

    kernel = functools.partial(_gin_kernel, add_loop=bool(add_loop),
                               has_mask=has_mask, folded=folded,
                               share_row=share_row)

    out = pl.pallas_call(
        kernel,
        out_shape=jax.ShapeDtypeStruct((b_pad, n_pad, DoutP), out_dtype),
        grid_spec=pltpu.PrefetchScalarGridSpec(
            num_scalar_prefetch=0,
            grid=(b_pad // bt, n_row_tiles, n_k_tiles),
            in_specs=specs,
            out_specs=pl.BlockSpec((bt, tm, DoutP), lambda b, r, k: (b, r, 0)),
            scratch_shapes=[pltpu.VMEM((bt, tm, Dmid), jnp.float32)],
        ),
        compiler_params=pltpu.CompilerParams(
            dimension_semantics=("parallel", "parallel", "arbitrary"),
            vmem_limit_bytes=vmem_limit,
        ),
    )(*inputs)

    if (b_pad, n_pad, DoutP) != (B, N, Dout):
        out = out[:B, :N, :Dout]
    return out


def _reference(x, adj, mask, w1, b1, w2, b2, eps=0.0, add_loop=True):
    xf = x.astype(jnp.float32)
    out = jnp.einsum("bij,bjd->bid", adj.astype(jnp.float32), xf)
    if add_loop:
        out = (1.0 + eps) * xf + out
    h = jnp.maximum(jnp.einsum("bnd,dh->bnh", out, w1.astype(jnp.float32)) + b1, 0.0)
    y = jnp.einsum("bnh,ho->bno", h, w2.astype(jnp.float32)) + b2
    if mask is not None:
        y = y * jnp.reshape(mask, (mask.shape[0], mask.shape[1], 1)).astype(y.dtype)
    return y


if __name__ == "__main__":
    key = jax.random.PRNGKey(0)

    def run_case(name, B, N, Din, H, Dout, eps, add_loop, use_mask, binary_adj, k):
        ks = jax.random.split(k, 7)
        x = jax.random.normal(ks[0], (B, N, Din), dtype=jnp.float32)
        if binary_adj:
            a = (jax.random.uniform(ks[1], (B, N, N)) < 0.15).astype(jnp.float32)
            adj = jnp.maximum(a, jnp.transpose(a, (0, 2, 1)))
        else:
            a = jax.random.uniform(ks[1], (B, N, N), dtype=jnp.float32)
            adj = 0.5 * (a + jnp.transpose(a, (0, 2, 1)))
        mask = None
        if use_mask:
            keep = (jax.random.uniform(ks[2], (B, N)) < 0.8).astype(jnp.float32)
            mask = keep.at[:, 0].set(1.0)
        std1 = math.sqrt(2.0 / (Din + H))
        std2 = math.sqrt(2.0 / (H + Dout))
        w1 = std1 * jax.random.normal(ks[3], (Din, H), dtype=jnp.float32)
        w2 = std2 * jax.random.normal(ks[4], (H, Dout), dtype=jnp.float32)
        b1 = 0.1 * jax.random.normal(ks[5], (H,), dtype=jnp.float32)
        b2 = 0.1 * jax.random.normal(ks[6], (Dout,), dtype=jnp.float32)

        y = dense_gin_forward(x, adj, w1, b1, w2, b2, mask=mask,
                              eps=eps, add_loop=add_loop)
        y = jax.block_until_ready(y)
        y_ref = _reference(x, adj, mask, w1, b1, w2, b2, eps=eps, add_loop=add_loop)
        assert y.shape == (B, N, Dout), f"{name}: bad shape {y.shape}"
        # bf16 MXU operands with f32 accumulation => loosened tolerance vs f32 ref.
        assert jnp.allclose(y, y_ref, atol=1e-1, rtol=5e-2), f"{name}: mismatch"

    k1, k2, k3 = jax.random.split(key, 3)
    # 1) tiny graphs, packed batch (bt=2), mask, self-loop; H > Din -> in-kernel MLP
    run_case("small", B=2, N=8, Din=16, H=32, Dout=32, eps=0.1,
             add_loop=True, use_mask=True, binary_adj=False, k=k1)
    # 2) misaligned graph (row/K tiling + padding), folded Linear1 (H <= Din), no mask
    run_case("tiled", B=3, N=150, Din=64, H=32, Dout=16, eps=0.2,
             add_loop=True, use_mask=False, binary_adj=True, k=k2)
    # 3) add_loop=False variant (no eps / self-loop inputs)
    run_case("noloop", B=2, N=8, Din=16, H=32, Dout=32, eps=0.0,
             add_loop=False, use_mask=True, binary_adj=False, k=k3)

    print("KERNEL_OK")
</pallas_src>

<mosaic_0001>
module attributes {stable_mosaic.version = 11 : i64} {
  func.func @_gin_kernel(%arg0: i32, %arg1: i32, %arg2: i32, %arg3: memref<1xf32, #tpu.memory_space<smem>>, %arg4: memref<2x8x8xf32, #tpu.memory_space<vmem>>, %arg5: memref<2x8x16xf32, #tpu.memory_space<vmem>>, %arg6: memref<2x8xf32, #tpu.memory_space<vmem>>, %arg7: memref<16x32xbf16, #tpu.memory_space<vmem>>, %arg8: memref<1x32xf32, #tpu.memory_space<vmem>>, %arg9: memref<32x128xbf16, #tpu.memory_space<vmem>>, %arg10: memref<1x128xf32, #tpu.memory_space<vmem>>, %arg11: memref<2x8x128xf32, #tpu.memory_space<vmem>>, %arg12: memref<2x8x16xf32, #tpu.memory_space<vmem>>) attributes {dimension_semantics = [#tpu.dimension_semantics<parallel>, #tpu.dimension_semantics<parallel>, #tpu.dimension_semantics<arbitrary>], iteration_bounds = array<i64: 1, 1, 1>, scalar_prefetch = 0 : i64, scratch_operands = 1 : i64, tpu.core_type = #tpu.core_type<tc>, window_params = [{transform_indices = @transform_0, window_bounds = array<i64: 1>}, {transform_indices = @transform_1, window_bounds = array<i64: 2, 8, 8>}, {transform_indices = @transform_2, window_bounds = array<i64: 2, 8, 16>}, {transform_indices = @transform_3, window_bounds = array<i64: 2, 8>}, {pipeline_mode = #tpu.pipeline_mode<synchronous>, transform_indices = @transform_4, window_bounds = array<i64: 16, 32>}, {pipeline_mode = #tpu.pipeline_mode<synchronous>, transform_indices = @transform_5, window_bounds = array<i64: 1, 32>}, {pipeline_mode = #tpu.pipeline_mode<synchronous>, transform_indices = @transform_6, window_bounds = array<i64: 32, 128>}, {pipeline_mode = #tpu.pipeline_mode<synchronous>, transform_indices = @transform_7, window_bounds = array<i64: 1, 128>}, {transform_indices = @transform_8, window_bounds = array<i64: 2, 8, 128>}]} {
    %c0_i32 = arith.constant 0 : i32
    %0 = arith.cmpi eq, %arg2, %c0_i32 : i32
    %1 = arith.extui %0 : i1 to i32
    %c0_i32_0 = arith.constant 0 : i32
    %2 = arith.cmpi ne, %1, %c0_i32_0 : i32
    scf.if %2 {
      %cst_14 = arith.constant 0.000000e+00 : f32
      %14 = vector.broadcast %cst_14 : f32 to vector<2x8x16xf32>
      %c0_15 = arith.constant 0 : index
      %c0_16 = arith.constant 0 : index
      %c0_17 = arith.constant 0 : index
      %15 = vector.load %arg12[%c0_15, %c0_16, %c0_17] : memref<2x8x16xf32, #tpu.memory_space<vmem>>, vector<2x8x16xf32>
      tpu.vector_store %arg12[%c0_15, %c0_16, %c0_17], %14 {strides = array<i32>} : memref<2x8x16xf32, #tpu.memory_space<vmem>>, vector<2x8x16xf32>,
    } else {
    }
    %c0 = arith.constant 0 : index
    %c0_1 = arith.constant 0 : index
    %c0_2 = arith.constant 0 : index
    %3 = vector.load %arg4[%c0, %c0_1, %c0_2] : memref<2x8x8xf32, #tpu.memory_space<vmem>>, vector<2x8x8xf32>
    %4 = arith.truncf %3 : vector<2x8x8xf32> to vector<2x8x8xbf16>
    %c0_3 = arith.constant 0 : index
    %c0_4 = arith.constant 0 : index
    %c0_5 = arith.constant 0 : index
    %5 = vector.load %arg5[%c0_3, %c0_4, %c0_5] : memref<2x8x16xf32, #tpu.memory_space<vmem>>, vector<2x8x16xf32>
    %6 = arith.truncf %5 : vector<2x8x16xf32> to vector<2x8x16xbf16>
    %c0_6 = arith.constant 0 : index
    %c0_7 = arith.constant 0 : index
    %c0_8 = arith.constant 0 : index
    %7 = vector.load %arg12[%c0_6, %c0_7, %c0_8] : memref<2x8x16xf32, #tpu.memory_space<vmem>>, vector<2x8x16xf32>
    "tpu.trace_start"() <{level = 10 : i32, message = "bij,bjd->bid"}> : () -> ()
    %cst = arith.constant dense<0.000000e+00> : vector<2x8x16xf32>
    %8 = tpu.matmul %4, %6, %cst {dimension_numbers = #tpu.dot_dimension_numbers<[2], [1], [1], [2], [0, 0, 0, 1, 1, 2], [0], [0]>} : vector<2x8x8xbf16>, vector<2x8x16xbf16>, vector<2x8x16xf32> -> vector<2x8x16xf32>
    "tpu.trace_stop"() : () -> ()
    %9 = arith.addf %7, %8 : vector<2x8x16xf32>
    %c0_9 = arith.constant 0 : index
    %c0_10 = arith.constant 0 : index
    %c0_11 = arith.constant 0 : index
    %10 = vector.load %arg12[%c0_9, %c0_10, %c0_11] : memref<2x8x16xf32, #tpu.memory_space<vmem>>, vector<2x8x16xf32>
    tpu.vector_store %arg12[%c0_9, %c0_10, %c0_11], %9 {strides = array<i32>} : memref<2x8x16xf32, #tpu.memory_space<vmem>>, vector<2x8x16xf32>,
    %c0_i32_12 = arith.constant 0 : i32
    %11 = arith.cmpi eq, %arg2, %c0_i32_12 : i32
    %12 = arith.extui %11 : i1 to i32
    %c0_i32_13 = arith.constant 0 : i32
    %13 = arith.cmpi ne, %12, %c0_i32_13 : i32
    scf.if %13 {
      %c0_14 = arith.constant 0 : index
      %c0_15 = arith.constant 0 : index
      %c0_16 = arith.constant 0 : index
      %14 = vector.load %arg12[%c0_14, %c0_15, %c0_16] : memref<2x8x16xf32, #tpu.memory_space<vmem>>, vector<2x8x16xf32>
      %c0_17 = arith.constant 0 : index
      %c0_18 = arith.constant 0 : index
      %c0_19 = arith.constant 0 : index
      %15 = vector.load %arg5[%c0_17, %c0_18, %c0_19] : memref<2x8x16xf32, #tpu.memory_space<vmem>>, vector<2x8x16xf32>
      %c0_20 = arith.constant 0 : index
      %16 = memref.load %arg3[%c0_20] : memref<1xf32, #tpu.memory_space<smem>>
      %17 = vector.broadcast %16 : f32 to vector<2x8x16xf32>
      %18 = arith.mulf %17, %15 : vector<2x8x16xf32>
      %19 = arith.addf %14, %18 : vector<2x8x16xf32>
      %20 = vector.shape_cast %19 : vector<2x8x16xf32> to vector<16x16xf32>
      %21 = arith.truncf %20 : vector<16x16xf32> to vector<16x16xbf16>
      %c0_21 = arith.constant 0 : index
      %c0_22 = arith.constant 0 : index
      %22 = vector.load %arg7[%c0_21, %c0_22] : memref<16x32xbf16, #tpu.memory_space<vmem>>, vector<16x32xbf16>
      %cst_23 = arith.constant dense<0.000000e+00> : vector<16x32xf32>
      %23 = tpu.matmul %21, %22, %cst_23 {dimension_numbers = #tpu.dot_dimension_numbers<[1], [0], [0], [1], [0, 0, 1, 1], [], []>} : vector<16x16xbf16>, vector<16x32xbf16>, vector<16x32xf32> -> vector<16x32xf32>
      %c0_24 = arith.constant 0 : index
      %c0_25 = arith.constant 0 : index
      %24 = vector.load %arg8[%c0_24, %c0_25] : memref<1x32xf32, #tpu.memory_space<vmem>>, vector<1x32xf32>
      %25 = vector.broadcast %24 : vector<1x32xf32> to vector<16x32xf32>
      %26 = arith.addf %23, %25 : vector<16x32xf32>
      %cst_26 = arith.constant 0.000000e+00 : f32
      %27 = vector.broadcast %cst_26 : f32 to vector<16x32xf32>
      %28 = arith.maximumf %26, %27 : vector<16x32xf32>
      %29 = arith.truncf %28 : vector<16x32xf32> to vector<16x32xbf16>
      %c0_27 = arith.constant 0 : index
      %c0_28 = arith.constant 0 : index
      %30 = vector.load %arg9[%c0_27, %c0_28] : memref<32x128xbf16, #tpu.memory_space<vmem>>, vector<32x128xbf16>
      %cst_29 = arith.constant dense<0.000000e+00> : vector<16x128xf32>
      %31 = tpu.matmul %29, %30, %cst_29 {dimension_numbers = #tpu.dot_dimension_numbers<[1], [0], [0], [1], [0, 0, 1, 1], [], []>} : vector<16x32xbf16>, vector<32x128xbf16>, vector<16x128xf32> -> vector<16x128xf32>
      %c0_30 = arith.constant 0 : index
      %c0_31 = arith.constant 0 : index
      %32 = vector.load %arg10[%c0_30, %c0_31] : memref<1x128xf32, #tpu.memory_space<vmem>>, vector<1x128xf32>
      %33 = vector.broadcast %32 : vector<1x128xf32> to vector<16x128xf32>
      %34 = arith.addf %31, %33 : vector<16x128xf32>
      %35 = vector.shape_cast %34 : vector<16x128xf32> to vector<2x8x128xf32>
      %c0_32 = arith.constant 0 : index
      %c0_33 = arith.constant 0 : index
      %36 = vector.load %arg6[%c0_32, %c0_33] : memref<2x8xf32, #tpu.memory_space<vmem>>, vector<2x8xf32>
      %37 = vector.shape_cast %36 : vector<2x8xf32> to vector<2x8x1xf32>
      %38 = vector.broadcast %37 : vector<2x8x1xf32> to vector<2x8x128xf32>
      %39 = arith.mulf %35, %38 : vector<2x8x128xf32>
      %c0_34 = arith.constant 0 : index
      %c0_35 = arith.constant 0 : index
      %c0_36 = arith.constant 0 : index
      %40 = vector.load %arg11[%c0_34, %c0_35, %c0_36] : memref<2x8x128xf32, #tpu.memory_space<vmem>>, vector<2x8x128xf32>
      tpu.vector_store %arg11[%c0_34, %c0_35, %c0_36], %39 {strides = array<i32>} : memref<2x8x128xf32, #tpu.memory_space<vmem>>, vector<2x8x128xf32>,
    } else {
    }
    return
  }
  func.func @transform_0(%arg0: i32, %arg1: i32, %arg2: i32) -> i32 {
    %c0_i32 = arith.constant 0 : i32
    %c0_i32_0 = arith.constant 0 : i32
    return %c0_i32 : i32
  }
  func.func @transform_1(%arg0: i32, %arg1: i32, %arg2: i32) -> (i32, i32, i32) {
    %c0_i32 = arith.constant 0 : i32
    return %arg0, %arg1, %arg2 : i32, i32, i32
  }
  func.func @transform_2(%arg0: i32, %arg1: i32, %arg2: i32) -> (i32, i32, i32) {
    %c0_i32 = arith.constant 0 : i32
    %c0_i32_0 = arith.constant 0 : i32
    return %arg0, %arg2, %c0_i32 : i32, i32, i32
  }
  func.func @transform_3(%arg0: i32, %arg1: i32, %arg2: i32) -> (i32, i32) {
    %c0_i32 = arith.constant 0 : i32
    return %arg0, %arg1 : i32, i32
  }
  func.func @transform_4(%arg0: i32, %arg1: i32, %arg2: i32) -> (i32, i32) {
    %c0_i32 = arith.constant 0 : i32
    %c0_i32_0 = arith.constant 0 : i32
    %c0_i32_1 = arith.constant 0 : i32
    return %c0_i32, %c0_i32_0 : i32, i32
  }
  func.func @transform_5(%arg0: i32, %arg1: i32, %arg2: i32) -> (i32, i32) {
    %c0_i32 = arith.constant 0 : i32
    %c0_i32_0 = arith.constant 0 : i32
    %c0_i32_1 = arith.constant 0 : i32
    return %c0_i32, %c0_i32_0 : i32, i32
  }
  func.func @transform_6(%arg0: i32, %arg1: i32, %arg2: i32) -> (i32, i32) {
    %c0_i32 = arith.constant 0 : i32
    %c0_i32_0 = arith.constant 0 : i32
    %c0_i32_1 = arith.constant 0 : i32
    return %c0_i32, %c0_i32_0 : i32, i32
  }
  func.func @transform_7(%arg0: i32, %arg1: i32, %arg2: i32) -> (i32, i32) {
    %c0_i32 = arith.constant 0 : i32
    %c0_i32_0 = arith.constant 0 : i32
    %c0_i32_1 = arith.constant 0 : i32
    return %c0_i32, %c0_i32_0 : i32, i32
  }
  func.func @transform_8(%arg0: i32, %arg1: i32, %arg2: i32) -> (i32, i32, i32) {
    %c0_i32 = arith.constant 0 : i32
    %c0_i32_0 = arith.constant 0 : i32
    return %arg0, %arg1, %c0_i32 : i32, i32, i32
  }
}

</mosaic_0001>

<bundles_post_ra>
// kernel: tpu_custom_call.1
= control target key start
LH: loop header
LB: loop body
LE: loop exit
PB: predicated region body
PF: predicated region fallthrough
CT: control target
= control target key end

     0   :  { %14 = vsyncpa [#allocation5], 0  ;;  %s652_s0 = inlined_call_operand.<no memory space> [shape: f32[1], index: 0, kind: input, shape index: {}]   ;;  %s653_s1 = inlined_call_operand.hbm [shape: f32[2,8,8], index: 1, kind: input, shape index: {}]   ;;  %s654_s2 = inlined_call_operand.hbm [shape: f32[2,8,16], index: 2, kind: input, shape index: {}]   ;;  %s655_s3 = inlined_call_operand.vmem [shape: f32[2,8], index: 3, kind: input, shape index: {}]   ;;  %s656_s4 = inlined_call_operand.hbm [shape: bf16[16,32], index: 4, kind: input, shape index: {}]   ;;  %s657_s5 = inlined_call_operand.vmem [shape: f32[1,32], index: 5, kind: input, shape index: {}]   ;;  %s658_s6 = inlined_call_operand.hbm [shape: bf16[32,128], index: 6, kind: input, shape index: {}]   ;;  %s659_s7 = inlined_call_operand.vmem [shape: f32[1,128], index: 7, kind: input, shape index: {}]   ;;  %s660_s8 = inlined_call_operand.hbm [shape: f32[2,8,128], index: 8, kind: output, shape index: {}]  }
   0x1   :  { %15 = vsyncpa [#allocation8], 0 }
   0x2   :  { %16 = vsyncpa [#allocation11], 0 }
   0x3   :  { %17 = vsyncpa [#allocation6], 0  ;;  %s551_s27 = smov [#allocation7]   ;;  %s552_s29 = smov [#allocation4]  }
   0x4   :  { %s37_s28 = sshll.u32 %s551_s27, 4  ;;  %s25_s30 = sshll.u32 %s552_s29, 4  ;;  %s38_s28 = int_to_ptr.vmem [resolvable:$true] %s37_s28  ;;  %s26_s30 = int_to_ptr.vmem [resolvable:$true] %s25_s30 }
   0x5   :  { %s451_s9 = scalar_lea.vmem %s38_s28, 256  ;;  %p456_p1 = scmp.lt.s32.totalorder %s38_s28, %s38_s28 }
   0x6   :  { %p452_p0 = scmp.ne.s32.totalorder %s38_s28, %s451_s9  ;;  %p457_p2 = scmp.lt.s32.totalorder %s451_s9, %s451_s9 }
   0x8   :  { %p458_p3 = por %p457_p2, %p456_p1 }
   0xa   :  { %p459_p4 = pnand %p458_p3, %p452_p0 }
   0xc   :  { %462 = shalt.err (!%p459_p4)
}
   0xd   :  { %s553_s10 = smov 128   ;;  %s554_s11 = smov 8  }
   0xe   :  { %43 = dma.hbm_to_vmem [thread:$0]  %s654_s2, 256, %s38_s28, [#allocation8], %s553_s10, %s553_s10, %s554_s11  }
   0xf   :  { %s471_s14 = scalar_lea.vmem %s26_s30, 256  ;;  %p476_p6 = scmp.lt.s32.totalorder %s26_s30, %s26_s30 }
  0x10   :  { %p472_p5 = scmp.ne.s32.totalorder %s26_s30, %s471_s14  ;;  %p477_p7 = scmp.lt.s32.totalorder %s471_s14, %s471_s14 }
  0x12   :  { %p478_p8 = por %p477_p7, %p476_p6 }
  0x14   :  { %p479_p9 = pnand %p478_p8, %p472_p5 }
  0x16   :  { %482 = shalt.err (!%p479_p9)
}
  0x17   :  { %31 = dma.hbm_to_vmem [thread:$0]  %s653_s1, 256, %s26_s30, [#allocation5], %s553_s10, %s553_s10, %s554_s11  }
  0x18   :  { %s555_s17 = smov [#allocation9]  }
  0x19   :  { %s51_s18 = sshll.u32 %s555_s17, 4  ;;  %s52_s18 = int_to_ptr.vmem [resolvable:$true] %s51_s18 }
  0x1a   :  { %s491_s19 = scalar_lea.vmem %s52_s18, 128  ;;  %p496_p11 = scmp.lt.s32.totalorder %s52_s18, %s52_s18 }
  0x1b   :  { %p492_p10 = scmp.ne.s32.totalorder %s52_s18, %s491_s19  ;;  %p497_p12 = scmp.lt.s32.totalorder %s491_s19, %s491_s19 }
  0x1d   :  { %p498_p13 = por %p497_p12, %p496_p11 }
  0x1f   :  { %p499_p0 = pnand %p498_p13, %p492_p10 }
  0x21   :  { %502 = shalt.err (!%p499_p0)
}
  0x22   :  { %s556_s2 = smov 64   ;;  %s557_s20 = smov 4  }
  0x23   :  { %57 = dma.hbm_to_vmem [thread:$0]  %s656_s4, 128, %s52_s18, [#allocation8], %s556_s2, %s556_s2, %s557_s20  }
  0x24   :  { %s558_s23 = smov [#allocation10]  }
  0x25   :  { %s65_s24 = sshll.u32 %s558_s23, 4  ;;  %s66_s24 = int_to_ptr.vmem [resolvable:$true] %s65_s24 }
  0x26   :  { %s511_s1 = scalar_lea.vmem %s66_s24, 256  ;;  %p516_p2 = scmp.lt.s32.totalorder %s66_s24, %s66_s24 }
  0x27   :  { %p512_p1 = scmp.ne.s32.totalorder %s66_s24, %s511_s1  ;;  %p517_p3 = scmp.lt.s32.totalorder %s511_s1, %s511_s1 }
  0x29   :  { %p518_p4 = por %p517_p3, %p516_p2 }
  0x2b   :  { %p519_p5 = pnand %p518_p4, %p512_p1 }
  0x2d   :  { %522 = shalt.err (!%p519_p5)
}
  0x2e   :  { %71 = dma.hbm_to_vmem [thread:$0]  %s658_s6, 256, %s66_s24, [#allocation11], %s556_s2, %s556_s2, %s557_s20  }
  0x2f   :  { %543 = dma.done.wait [#allocation5], 256  }
  0x30   :  { %544 = vsyncadd [#allocation5], 4294967040 }
  0x31   :  { %545 = dma.done.wait [#allocation8], 384  }
  0x32   :  { %546 = vsyncadd [#allocation8], 4294966912 }
  0x33   :  { %547 = dma.done.wait [#allocation11], 256  }
  0x34   :  { %548 = vsyncadd [#allocation11], 4294967040  ;;  %v559_v0 = vmov 0.0   ;;  %vm91_vm0 = vcmask 130048   ;;  %vm560_vm1 = vmmov 0   ;;  %v98_v1 = vld [vmem:[#allocation7] sm:$0xff]  ;;  %v211_v22 = vstv %s652_s0 }
  0x35   :  { %403 = vmatprep.subr.bf16.mxu0 %v559_v0  ;;  %409 = vmatprep.subr.bf16.mxu1 %v559_v0  ;;  %92 = vst.msk [vmem:[#allocation2] sm:$0xff] %vm91_vm0, %v559_v0  ;;  %93 = vst.msk [vmem:[#allocation2 + $0x8] sm:$0xff] %vm91_vm0, %v559_v0  ;;  %vm108_vm2 = vcmask 1043456   ;;  %v99_v2 = vld [vmem:[#allocation7 + $0x8] sm:$0xff]  ;;  %v94_v3 = vld [vmem:[#allocation4] sm:$0xff]  ;;  %v100_v4 = vpack.c.bf16 %v98_v1, %v98_v1  ;;  %vm104_vm3 = vcmask 64512   ;;  %v212_v25 = vmul.f32 %v211_v22, %v98_v1 }
  0x36   :  { %405 = vmatprep.mubr.msk.bf16.mxu0 %vm560_vm1, %v559_v0  ;;  %411 = vmatprep.mubr.msk.bf16.mxu1 %vm560_vm1, %v559_v0  ;;  %v101_v5 = vpack.c.bf16 %v99_v2, %v99_v2  ;;  %v95_v6 = vld [vmem:[#allocation4 + $0x8] sm:$0xff]  ;;  %v96_v9 = vpack.c.bf16 %v94_v3, %v94_v3  ;;  %v440_v11 = vld [vmem:[#allocation9] sm:$0xff]   ;;  %v213_v26 = vmul.f32 %v211_v22, %v99_v2  ;;  %v441_v32 = vld [vmem:[#allocation10 + $0x8] sm:$0xff]   ;;  %v348_v34 = vlaneseq }
  0x37   :  { %v110_v7 = vsel %vm108_vm2, %v100_v4, 0  ;;  %v97_v10 = vpack.c.bf16 %v95_v6, %v95_v6  ;;  %v442_v33 = vld [vmem:[#allocation10] sm:$0xff]   ;;  %v347_v36 = vld [vmem:[%s655_s3] sm:$0x3]  ;;  %vm302_vm4 = vcmask 261120  }
  0x38   :  { %v156_v8 = vsel %vm108_vm2, %v101_v5, 0  ;;  %404 = vmatpush3.bf16.msra.mxu0 %v110_v7  ;;  %v349_v35 = vshrl.u32 %v348_v34, 7  ;;  %v387_v41 = vld [vmem:[%s657_s5] ss:$0 sm:$0xff]  ;;  %s561_s5 = smov [#allocation12]  }
  0x39   :  { %410 = vmatpush3.bf16.msra.mxu1 %v156_v8  ;;  %415 = vmatprep.subr.bf16.mxu0 %v559_v0  ;;  %v390_v51 = vld [vmem:[%s659_s7] ss:$0 sm:$0xff]  ;;  %s371_s9 = sshll.u32 %s561_s5, 4  ;;  %s372_s9 = int_to_ptr.vmem [resolvable:$true] %s371_s9 }
  0x3a   :  { %421 = vmatprep.subr.bf16.mxu1 %v559_v0  ;;  %v350_v37 = vsub.s32 0, %v349_v35  ;;  %v357_v38 = vsub.s32 1, %v349_v35  ;;  %s523_s12 = scalar_lea.vmem %s372_s9, 256  ;;  %p528_p7 = scmp.lt.s32.totalorder %s372_s9, %s372_s9 }
  0x3b   :  { %406 = vmatmul.mubr.msk.bf16.vlgmr.msra.gmra.mxu0 %vm104_vm3, %v96_v9  ;;  %p524_p6 = scmp.ne.s32.totalorder %s372_s9, %s523_s12  ;;  %p529_p8 = scmp.lt.s32.totalorder %s523_s12, %s523_s12 }
  0x3c   :  { %412 = vmatmul.mubr.msk.bf16.vlgmr.msra.gmra.mxu1 %vm104_vm3, %v97_v10  ;;  %417 = vmatprep.mubr.msk.bf16.mxu0 %vm560_vm1, %v559_v0  ;;  %v102_v12 = vld [vmem:[#allocation2] sm:$0xff]  ;;  %v103_v13 = vld [vmem:[#allocation2 + $0x8] sm:$0xff]  ;;  %v351_v39 = vrot.slane %v347_v36, %v350_v37  ;;  %v358_v40 = vrot.slane %v347_v36, %v357_v38 }
  0x3d   :  { %425 = vmatprep.mubr.msk.bf16.mxu1 %vm560_vm1, %v559_v0  ;;  %416 = vmatpush3.bf16.msra.mxu0 %v440_v11  ;;  %p530_p9 = por %p529_p8, %p528_p7 }
  0x3e   :  { %422 = vmatpush3.bf16.msra.mxu1 %v441_v32  ;;  %353 = vbcast.lane.b32.xlu0 %v351_v39, 256 }
  0x3f   :  { %423 = vmatprep.subr.bf16.mxu1 %v559_v0  ;;  %p531_p10 = pnand %p530_p9, %p524_p6 }
  0x42   :  { %424 = vmatpush3.bf16.msra.mxu1 %v442_v33  ;;  %360 = vbcast.lane.b32.xlu0 %v358_v40, 256 }
  0xb0   :  { %v354_v52 = vpop.permute.xlu0 %353 }
  0xb4   :  { %v361_v58 = vpop.permute.xlu0 %360 }
  0xfb   :  { %v146_v14 = vpop.f32.mrf.mxu0 }
  0xfc   :  { %v192_v15 = vpop.f32.mrf.mxu1  ;;  %v198_v16 = vadd.f32 %v146_v14, %v102_v12 }
  0xfd   :  { %v199_v17 = vadd.f32 %v192_v15, %v103_v13  ;;  %v407_v18 = vpop.f32.mrf.mxu0 }
  0xfe   :  { %v413_v19 = vpop.f32.mrf.mxu1  ;;  %201 = vst.msk [vmem:[#allocation2] sm:$0xff] %vm91_vm0, %v198_v16 }
  0xff   :  { %202 = vst.msk [vmem:[#allocation2 + $0x8] sm:$0xff] %vm91_vm0, %v199_v17  ;;  %v149_v20 = vpop.f32.mrf.mxu0 }
 0x100   :  { %v195_v21 = vpop.f32.mrf.mxu1 }
 0x101   :  { %v408_v23 = vpop.f32.mrf.mxu0 }
 0x102   :  { %v414_v24 = vpop.f32.mrf.mxu1 }
 0x105   :  { %v206_v27 = vld [vmem:[#allocation2] sm:$0xff] }
 0x106   :  { %v207_v28 = vld [vmem:[#allocation2 + $0x8] sm:$0xff]  ;;  %v214_v29 = vadd.f32 %v212_v25, %v206_v27 }
 0x107   :  { %v215_v30 = vadd.f32 %v213_v26, %v207_v28 }
 0x109   :  { %v216_v31 = vpack.c.bf16 %v215_v30, %v214_v29 }
 0x10b   :  { %418 = vmatmul.mubr.msk.bf16.vlgmr.msra.gmra.mxu0 %vm91_vm0, %v216_v31 }
 0x1cb   :  { %v269_v42 = vpop.f32.mrf.mxu0 }
 0x1cc   :  { %v270_v44 = vadd.f32 %v387_v41, %v269_v42 }
 0x1cd   :  { %v419_v43 = vpop.f32.mrf.mxu0 }
 0x1ce   :  { %v276_v48 = vmax.f32 %v270_v44, 0.0 }
 0x1cf   :  { %v272_v45 = vpop.f32.mrf.mxu0 }
 0x1d0   :  { %v273_v46 = vadd.f32 %v387_v41, %v272_v45 }
 0x1d1   :  { %v420_v47 = vpop.f32.mrf.mxu0 }
 0x1d2   :  { %v277_v49 = vmax.f32 %v273_v46, 0.0 }
 0x1d4   :  { %v278_v50 = vpack.c.bf16 %v277_v49, %v276_v48 }
 0x1d6   :  { %426 = vmatmul.mubr.msk.bf16.vlgmr.msra.gmra.mxu1 %vm302_vm4, %v278_v50 }
 0x296   :  { %v340_v53 = vpop.f32.mrf.mxu1 }
 0x297   :  { %v341_v54 = vadd.f32 %v390_v51, %v340_v53 }
 0x298   :  { %v427_v55 = vpop.f32.mrf.mxu1 }
 0x299   :  { %v362_v56 = vmul.f32 %v354_v52, %v341_v54 }
 0x29a   :  { %v343_v57 = vpop.f32.mrf.mxu1 }
 0x29b   :  { %364 = vst [vmem:[#allocation12] sm:$0xff] %v362_v56  ;;  %v344_v59 = vadd.f32 %v390_v51, %v343_v57 }
 0x29c   :  { %v428_v60 = vpop.f32.mrf.mxu1 }
 0x29d   :  { %v363_v61 = vmul.f32 %v361_v58, %v344_v59 }
 0x29f   :  { %365 = vst [vmem:[#allocation12 + $0x8] sm:$0xff] %v363_v61 }
 0x2a0   :  { %534 = shalt.err (!%p531_p10)
}
 0x2a1   :  { %377 = dma.vmem_to_hbm [thread:$0]  %s372_s9, 256, %s660_s8, [#allocation6], %s553_s10, %s553_s10, %s554_s11  }
 0x2a2   :  { %549 = dma.done.wait [#allocation6], 256  }
 0x2a3   :  { %550 = vsyncadd [#allocation6], 4294967040 }
 0x2a4   :  { %381 = vsyncpa [#allocation5], 1 }
 0x2a5   :  { %382 = vsyncpa [#allocation8], 1 }
 0x2a6   :  { %383 = vsyncpa [#allocation11], 1 }
 0x2a7   :  { %384 = vsyncpa [#allocation6], 1 }

</bundles_post_ra>
